<compile_context>
chip_gen: v7x
topology: tpu7x:2x2x1
jax: 0.10.0
libtpu: 0.0.40
codegen_flags: <defaults>
</compile_context>

<pallas_src>
import math

import jax
import jax.numpy as jnp
from jax import lax
from jax.experimental import pallas as pl
from jax.experimental.pallas import tpu as pltpu


# ----------------------------------------------------------------------------
# Fused kernel: discriminator MLP (bf16 MXU, f32 accum/tail) + BCEWithLogits
# ----------------------------------------------------------------------------
def _make_daan_global_loss_kernel(bs, bt):
    def kernel(f_ref, w1_ref, b1_ref, w2_ref, b2_ref, w3_ref, b3_ref, loss_ref):
        # GRL forward is identity (coeff only affects backward); the concat of
        # (f_s, f_t) already happened in the wrapper: f_ref is (Bs+Bt, D) f32.
        f = f_ref[...]                                                # (2B, D) f32

        # Layer 1: bf16 MXU operands, f32 accumulation, f32 bias/ReLU.
        h = jnp.dot(f.astype(jnp.bfloat16), w1_ref[...],
                    preferred_element_type=jnp.float32) + b1_ref[...]
        h = jnp.maximum(h, 0.0)

        # Layer 2: cast activations back to bf16 only for the MXU.
        h = jnp.dot(h.astype(jnp.bfloat16), w2_ref[...],
                    preferred_element_type=jnp.float32) + b2_ref[...]
        h = jnp.maximum(h, 0.0)

        # Final (H -> 1) projection on the VPU/XLU (f32): broadcast-mul + lane
        # reduce; a 1-wide MXU matmul would waste the MXU.
        d = jnp.sum(h * w3_ref[...], axis=1, keepdims=True) + b3_ref[0]  # (2B,1)

        # BCEWithLogitsLoss (mean reduction), stable softplus form:
        #   label 1 (source rows): softplus(-x);  label 0 (target rows): softplus(x)
        # folded into one weighted one-pass reduction over all rows.
        # NOTE: matches torch's d.chunk(2) exactly when Bs == Bt (the standard
        # DANN setting); for Bs != Bt this splits at the true domain boundary.
        row = lax.broadcasted_iota(jnp.int32, (bs + bt, 1), 0)
        is_src = row < bs
        sign = jnp.where(is_src, -1.0, 1.0)
        wgt = jnp.where(is_src, 0.5 / bs, 0.5 / bt)

        z = sign * d
        softplus = jnp.maximum(z, 0.0) + jnp.log1p(jnp.exp(-jnp.abs(z)))
        loss_ref[...] = jnp.sum(wgt * softplus, axis=0, keepdims=True)   # (1, 1)

    return kernel


def daan_loss_forward(source, target, source_logits, target_logits, params):
    """Matches DAANLoss.forward: only the global adversarial loss is returned.

    source, target: (B, D) f32 feature batches.
    source_logits, target_logits: accepted but unused (as in the PyTorch forward).
    params: pre-transposed discriminator parameters
            (w1t (D,H) bf16, b1 (1,H) f32, w2t (H,H) bf16, b2 (1,H) f32,
             w3row (1,H) f32, b3 (1,) f32)
    """
    del source_logits, target_logits   # unused by the reference forward
    w1t, b1, w2t, b2, w3row, b3 = params

    bs, feat_dim = source.shape
    bt = target.shape[0]
    hidden = w1t.shape[1]

    # Hoist torch.cat to the wrapper: trivial, overlappable, and guarantees the
    # kernel's first matmul reads one contiguous, tile-aligned (2B, D) slab.
    f = jnp.concatenate([source, target], axis=0)

    n_rows = bs + bt
    flops = 2 * n_rows * (feat_dim * hidden + hidden * hidden) + 2 * n_rows * hidden
    bytes_accessed = (
        n_rows * feat_dim * 4                  # f (f32)
        + (feat_dim * hidden + hidden * hidden) * 2   # w1t, w2t (bf16)
        + (2 * hidden + hidden + 1) * 4        # b1, b2, w3row, b3 (f32)
        + 4                                    # scalar output
    )
    cost = pl.CostEstimate(flops=flops,
                           transcendentals=2 * n_rows,
                           bytes_accessed=bytes_accessed)

    loss = pl.pallas_call(
        _make_daan_global_loss_kernel(bs, bt),
        out_shape=jax.ShapeDtypeStruct((1, 1), jnp.float32),
        in_specs=[
            pl.BlockSpec(memory_space=pltpu.MemorySpace.VMEM),   # f = cat(f_s, f_t)
            pl.BlockSpec(memory_space=pltpu.MemorySpace.VMEM),   # w1.T  (D, H) bf16
            pl.BlockSpec(memory_space=pltpu.MemorySpace.VMEM),   # b1    (1, H) f32
            pl.BlockSpec(memory_space=pltpu.MemorySpace.VMEM),   # w2.T  (H, H) bf16
            pl.BlockSpec(memory_space=pltpu.MemorySpace.VMEM),   # b2    (1, H) f32
            pl.BlockSpec(memory_space=pltpu.MemorySpace.VMEM),   # w3 row (1, H) f32
            pl.BlockSpec(memory_space=pltpu.MemorySpace.SMEM),   # b3 scalar (1,)
        ],
        out_specs=pl.BlockSpec(memory_space=pltpu.MemorySpace.VMEM),
        cost_estimate=cost,
    )(f, w1t, b1, w2t, b2, w3row, b3)
    return loss[0, 0]


# ----------------------------------------------------------------------------
# Parameter init (PyTorch nn.Linear default init), stored PRE-TRANSPOSED.
# Matmul weights are quantized to bf16 at init (MXU operands); biases and the
# final VPU projection row stay f32.
# ----------------------------------------------------------------------------
# TODO(synk): DAANLoss takes `domain_discriminator` as an injected nn.Module; a
# standard DANN-style 3-layer ReLU MLP (no BatchNorm) is used as the
# representative instance here.
def init_discriminator_params(key, feat_dim, hidden):
    ks = jax.random.split(key, 6)

    def linear(kw, kb, fan_in, fan_out):
        bound = 1.0 / math.sqrt(fan_in)
        # stored as (fan_in, fan_out) so no transpose is needed at call time
        w = jax.random.uniform(kw, (fan_in, fan_out), jnp.float32, -bound, bound)
        b = jax.random.uniform(kb, (1, fan_out), jnp.float32, -bound, bound)
        return w, b

    w1t, b1 = linear(ks[0], ks[1], feat_dim, hidden)
    w2t, b2 = linear(ks[2], ks[3], hidden, hidden)
    w3t, b3c = linear(ks[4], ks[5], hidden, 1)
    w3row = w3t.T                       # (1, hidden) — done once, at init
    b3 = b3c.reshape((1,))
    return (w1t.astype(jnp.bfloat16), b1,
            w2t.astype(jnp.bfloat16), b2,
            w3row, b3)


# ----------------------------------------------------------------------------
# Pure-JAX references (for validation)
# ----------------------------------------------------------------------------
def _mlp_logits(f, params, *, bf16_matmul):
    w1t, b1, w2t, b2, w3row, b3 = params
    if bf16_matmul:
        h = jnp.dot(f.astype(jnp.bfloat16), w1t.astype(jnp.bfloat16),
                    preferred_element_type=jnp.float32) + b1
        h = jax.nn.relu(h)
        h = jnp.dot(h.astype(jnp.bfloat16), w2t.astype(jnp.bfloat16),
                    preferred_element_type=jnp.float32) + b2
    else:
        hp = lax.Precision.HIGHEST
        h = jax.nn.relu(jnp.dot(f, w1t.astype(jnp.float32), precision=hp) + b1)
        h = jnp.dot(h, w2t.astype(jnp.float32), precision=hp) + b2
    h = jax.nn.relu(h)
    return jnp.sum(h * w3row, axis=1, keepdims=True) + b3[0]


def daan_loss_reference(f_s, f_t, params, *, bf16_matmul):
    f = jnp.concatenate([f_s, f_t], axis=0)
    d = _mlp_logits(f, params, bf16_matmul=bf16_matmul)
    d_s, d_t = jnp.split(d, 2, axis=0)
    return 0.5 * (jnp.mean(jax.nn.softplus(-d_s)) + jnp.mean(jax.nn.softplus(d_t)))


if __name__ == "__main__":
    batch = 8          # per-domain batch size
    feat_dim = 128     # lane-dense feature width
    hidden = 128       # discriminator hidden width
    num_class = 3

    key = jax.random.PRNGKey(0)
    k_s, k_t, k_ls, k_lt, k_p = jax.random.split(key, 5)

    f_s = jax.random.normal(k_s, (batch, feat_dim), jnp.float32)
    f_t = jax.random.normal(k_t, (batch, feat_dim), jnp.float32)
    source_logits = jax.random.normal(k_ls, (batch, num_class), jnp.float32)
    target_logits = jax.random.normal(k_lt, (batch, num_class), jnp.float32)
    params = init_discriminator_params(k_p, feat_dim, hidden)

    fwd = jax.jit(daan_loss_forward)
    loss = fwd(f_s, f_t, source_logits, target_logits, params)
    jax.block_until_ready(loss)

    # Reference with the same bf16-MXU / f32-accumulate path (tight check).
    ref_bf16 = daan_loss_reference(f_s, f_t, params, bf16_matmul=True)
    # Full-f32 HIGHEST-precision reference (loose sanity check on bf16 quant).
    ref_f32 = daan_loss_reference(f_s, f_t, params, bf16_matmul=False)

    assert loss.shape == ()
    assert bool(jnp.isfinite(loss))
    assert abs(float(loss) - float(ref_bf16)) <= 2e-3 * max(1.0, abs(float(ref_bf16))), (
        float(loss), float(ref_bf16))
    assert abs(float(loss) - float(ref_f32)) <= 3e-2 * max(1.0, abs(float(ref_f32))), (
        float(loss), float(ref_f32))
    print("KERNEL_OK")
</pallas_src>

<mosaic_0001>
module attributes {stable_mosaic.version = 11 : i64} {
  func.func @kernel(%arg0: memref<16x128xf32, #tpu.memory_space<vmem>>, %arg1: memref<128x128xbf16, #tpu.memory_space<vmem>>, %arg2: memref<1x128xf32, #tpu.memory_space<vmem>>, %arg3: memref<128x128xbf16, #tpu.memory_space<vmem>>, %arg4: memref<1x128xf32, #tpu.memory_space<vmem>>, %arg5: memref<1x128xf32, #tpu.memory_space<vmem>>, %arg6: memref<1xf32, #tpu.memory_space<smem>>, %arg7: memref<1x1xf32, #tpu.memory_space<vmem>>) attributes {dimension_semantics = [], scalar_prefetch = 0 : i64, scratch_operands = 0 : i64, tpu.core_type = #tpu.core_type<tc>} {
    %c0 = arith.constant 0 : index
    %c0_0 = arith.constant 0 : index
    %0 = vector.load %arg0[%c0, %c0_0] : memref<16x128xf32, #tpu.memory_space<vmem>>, vector<16x128xf32>
    %1 = arith.truncf %0 : vector<16x128xf32> to vector<16x128xbf16>
    %c0_1 = arith.constant 0 : index
    %c0_2 = arith.constant 0 : index
    %2 = vector.load %arg1[%c0_1, %c0_2] : memref<128x128xbf16, #tpu.memory_space<vmem>>, vector<128x128xbf16>
    %cst = arith.constant dense<0.000000e+00> : vector<16x128xf32>
    %3 = tpu.matmul %1, %2, %cst {dimension_numbers = #tpu.dot_dimension_numbers<[1], [0], [0], [1], [0, 0, 1, 1], [], []>} : vector<16x128xbf16>, vector<128x128xbf16>, vector<16x128xf32> -> vector<16x128xf32>
    %c0_3 = arith.constant 0 : index
    %c0_4 = arith.constant 0 : index
    %4 = vector.load %arg2[%c0_3, %c0_4] : memref<1x128xf32, #tpu.memory_space<vmem>>, vector<1x128xf32>
    %5 = vector.broadcast %4 : vector<1x128xf32> to vector<16x128xf32>
    %6 = arith.addf %3, %5 : vector<16x128xf32>
    %cst_5 = arith.constant 0.000000e+00 : f32
    %7 = vector.broadcast %cst_5 : f32 to vector<16x128xf32>
    %8 = arith.maximumf %6, %7 : vector<16x128xf32>
    %9 = arith.truncf %8 : vector<16x128xf32> to vector<16x128xbf16>
    %c0_6 = arith.constant 0 : index
    %c0_7 = arith.constant 0 : index
    %10 = vector.load %arg3[%c0_6, %c0_7] : memref<128x128xbf16, #tpu.memory_space<vmem>>, vector<128x128xbf16>
    %cst_8 = arith.constant dense<0.000000e+00> : vector<16x128xf32>
    %11 = tpu.matmul %9, %10, %cst_8 {dimension_numbers = #tpu.dot_dimension_numbers<[1], [0], [0], [1], [0, 0, 1, 1], [], []>} : vector<16x128xbf16>, vector<128x128xbf16>, vector<16x128xf32> -> vector<16x128xf32>
    %c0_9 = arith.constant 0 : index
    %c0_10 = arith.constant 0 : index
    %12 = vector.load %arg4[%c0_9, %c0_10] : memref<1x128xf32, #tpu.memory_space<vmem>>, vector<1x128xf32>
    %13 = vector.broadcast %12 : vector<1x128xf32> to vector<16x128xf32>
    %14 = arith.addf %11, %13 : vector<16x128xf32>
    %cst_11 = arith.constant 0.000000e+00 : f32
    %15 = vector.broadcast %cst_11 : f32 to vector<16x128xf32>
    %16 = arith.maximumf %14, %15 : vector<16x128xf32>
    %c0_12 = arith.constant 0 : index
    %c0_13 = arith.constant 0 : index
    %17 = vector.load %arg5[%c0_12, %c0_13] : memref<1x128xf32, #tpu.memory_space<vmem>>, vector<1x128xf32>
    %18 = vector.broadcast %17 : vector<1x128xf32> to vector<16x128xf32>
    %19 = arith.mulf %16, %18 : vector<16x128xf32>
    %cst_14 = arith.constant dense<0.000000e+00> : vector<16xf32>
    %20 = vector.multi_reduction <add>, %19, %cst_14 [1] : vector<16x128xf32> to vector<16xf32>
    %21 = vector.shape_cast %20 : vector<16xf32> to vector<16x1xf32>
    %c0_15 = arith.constant 0 : index
    %22 = memref.load %arg6[%c0_15] : memref<1xf32, #tpu.memory_space<smem>>
    %23 = vector.broadcast %22 : f32 to vector<16x1xf32>
    %24 = arith.addf %21, %23 : vector<16x1xf32>
    %25 = tpu.iota {dimensions = array<i32: 0>} : vector<16x1xi32>
    %c8_i32 = arith.constant 8 : i32
    %26 = vector.broadcast %c8_i32 : i32 to vector<16x1xi32>
    %27 = arith.cmpi slt, %25, %26 : vector<16x1xi32>
    %cst_16 = arith.constant -1.000000e+00 : f32
    %cst_17 = arith.constant 1.000000e+00 : f32
    %28 = vector.broadcast %cst_16 : f32 to vector<16x1xf32>
    %29 = vector.broadcast %cst_17 : f32 to vector<16x1xf32>
    %30 = arith.select %27, %28, %29 : vector<16x1xi1>, vector<16x1xf32>
    %cst_18 = arith.constant 6.250000e-02 : f32
    %cst_19 = arith.constant 6.250000e-02 : f32
    %31 = vector.broadcast %cst_18 : f32 to vector<16x1xf32>
    %32 = vector.broadcast %cst_19 : f32 to vector<16x1xf32>
    %33 = arith.select %27, %31, %32 : vector<16x1xi1>, vector<16x1xf32>
    %34 = arith.mulf %30, %24 : vector<16x1xf32>
    %cst_20 = arith.constant 0.000000e+00 : f32
    %35 = vector.broadcast %cst_20 : f32 to vector<16x1xf32>
    %36 = arith.maximumf %34, %35 : vector<16x1xf32>
    %37 = math.absf %34 : vector<16x1xf32>
    %cst_21 = arith.constant 0.000000e+00 : f32
    %38 = vector.broadcast %cst_21 : f32 to vector<16x1xf32>
    %39 = arith.subf %38, %37 : vector<16x1xf32>
    %40 = math.exp %39 : vector<16x1xf32>
    %41 = math.log1p %40 : vector<16x1xf32>
    %42 = arith.addf %36, %41 : vector<16x1xf32>
    %43 = arith.mulf %33, %42 : vector<16x1xf32>
    %cst_22 = arith.constant dense<0.000000e+00> : vector<1xf32>
    %44 = vector.multi_reduction <add>, %43, %cst_22 [0] : vector<16x1xf32> to vector<1xf32>
    %45 = vector.shape_cast %44 : vector<1xf32> to vector<1x1xf32>
    %c0_23 = arith.constant 0 : index
    %c0_24 = arith.constant 0 : index
    %46 = vector.load %arg7[%c0_23, %c0_24] : memref<1x1xf32, #tpu.memory_space<vmem>>, vector<1x1xf32>
    tpu.vector_store %arg7[%c0_23, %c0_24], %45 {strides = array<i32>} : memref<1x1xf32, #tpu.memory_space<vmem>>, vector<1x1xf32>,
    return
  }
}

</mosaic_0001>

<bundles_post_ra>
// kernel: daan_loss_forward.1
= control target key start
LH: loop header
LB: loop body
LE: loop exit
PB: predicated region body
PF: predicated region fallthrough
CT: control target
= control target key end

     0   :  { %13 = vsyncpa [#allocation4], 0  ;;  %s653_s0 = inlined_call_operand.vmem [shape: f32[16,128], index: 0, kind: input, shape index: {}]   ;;  %s654_s1 = inlined_call_operand.hbm [shape: bf16[128,128], index: 1, kind: input, shape index: {}]   ;;  %s655_s2 = inlined_call_operand.vmem [shape: f32[1,128], index: 2, kind: input, shape index: {}]   ;;  %s656_s3 = inlined_call_operand.hbm [shape: bf16[128,128], index: 3, kind: input, shape index: {}]   ;;  %s657_s4 = inlined_call_operand.vmem [shape: f32[1,128], index: 4, kind: input, shape index: {}]   ;;  %s658_s5 = inlined_call_operand.vmem [shape: f32[1,128], index: 5, kind: input, shape index: {}]   ;;  %s659_s6 = inlined_call_operand.<no memory space> [shape: f32[1], index: 6, kind: input, shape index: {}]   ;;  %s660_s7 = inlined_call_operand.hbm [shape: f32[1,1], index: 7, kind: output, shape index: {}]  }
   0x1   :  { %14 = vsyncpa [#allocation7], 0 }
   0x2   :  { %15 = vsyncpa [#allocation5], 0  ;;  %s552_s24 = smov [#allocation3]   ;;  %s480_s28 = scalar_lea.hbm %s654_s1, 1024 }
   0x3   :  { %s23_s25 = sshll.u32 %s552_s24, 4  ;;  %p481_p0 = scmp.ne.s32.totalorder %s654_s1, %s480_s28  ;;  %s24_s25 = int_to_ptr.vmem [resolvable:$true] %s23_s25 }
   0x4   :  { %p484_p1 = scmp.lt.u32.totalorder %s480_s28, %s654_s1 }
   0x6   :  { %p486_p2 = pnand %p484_p1, %p481_p0 }
   0x8   :  { %489 = shalt.err (!%p486_p2)
}
   0x9   :  { %s490_s10 = scalar_lea.vmem %s24_s25, 1024  ;;  %p495_p4 = scmp.lt.s32.totalorder %s24_s25, %s24_s25 }
   0xa   :  { %p491_p3 = scmp.ne.s32.totalorder %s24_s25, %s490_s10  ;;  %p496_p5 = scmp.lt.s32.totalorder %s490_s10, %s490_s10 }
   0xc   :  { %p497_p6 = por %p496_p5, %p495_p4 }
   0xe   :  { %p498_p7 = pnand %p497_p6, %p491_p3 }
  0x10   :  { %501 = shalt.err (!%p498_p7)
}
  0x11   :  { %s553_s11 = smov 64   ;;  %s554_s12 = smov 4  }
  0x12   :  { %29 = dma.hbm_to_vmem [thread:$0]  %s654_s1, 1024, %s24_s25, [#allocation4], %s553_s11, %s553_s11, %s554_s12  }
  0x13   :  { %s555_s15 = smov [#allocation6]   ;;  %s502_s19 = scalar_lea.hbm %s656_s3, 1024 }
  0x14   :  { %s37_s16 = sshll.u32 %s555_s15, 4  ;;  %p503_p8 = scmp.ne.s32.totalorder %s656_s3, %s502_s19  ;;  %s38_s16 = int_to_ptr.vmem [resolvable:$true] %s37_s16 }
  0x15   :  { %p506_p9 = scmp.lt.u32.totalorder %s502_s19, %s656_s3 }
  0x17   :  { %p508_p10 = pnand %p506_p9, %p503_p8 }
  0x19   :  { %511 = shalt.err (!%p508_p10)
}
  0x1a   :  { %s512_s24 = scalar_lea.vmem %s38_s16, 1024  ;;  %p517_p12 = scmp.lt.s32.totalorder %s38_s16, %s38_s16 }
  0x1b   :  { %p513_p11 = scmp.ne.s32.totalorder %s38_s16, %s512_s24  ;;  %p518_p13 = scmp.lt.s32.totalorder %s512_s24, %s512_s24 }
  0x1d   :  { %p519_p0 = por %p518_p13, %p517_p12 }
  0x1f   :  { %p520_p1 = pnand %p519_p0, %p513_p11 }
  0x21   :  { %523 = shalt.err (!%p520_p1)
}
  0x22   :  { %43 = dma.hbm_to_vmem [thread:$0]  %s656_s3, 1024, %s38_s16, [#allocation7], %s553_s11, %s553_s11, %s554_s12  }
  0x23   :  { %546 = dma.done.wait [#allocation4], 1024  }
  0x24   :  { %547 = vsyncadd [#allocation4], 4294966272 }
  0x25   :  { %548 = dma.done.wait [#allocation7], 1024  }
  0x26   :  { %549 = vsyncadd [#allocation7], 4294966272  ;;  %v556_v0 = vmov 0.0   ;;  %vm557_vm0 = vmmov 0   ;;  %v456_v1 = vld [vmem:[#allocation3] sm:$0xff]   ;;  %v457_v2 = vld [vmem:[#allocation3 + $0x8] sm:$0xff]   ;;  %v303_v42 = vstv %s659_s6 }
  0x27   :  { %409 = vmatprep.subr.bf16.mxu0 %v556_v0  ;;  %425 = vmatprep.mubr.msk.bf16.mxu0 %vm557_vm0, %v556_v0  ;;  %v458_v3 = vld [vmem:[#allocation3 + $0x10] sm:$0xff]   ;;  %v464_v4 = vld [vmem:[#allocation6] sm:$0xff]   ;;  %v459_v5 = vld [vmem:[#allocation3 + $0x18] sm:$0xff]   ;;  %vm354_vm3 = vcmask 0  }
  0x28   :  { %429 = vmatprep.subr.bf16.mxu1 %v556_v0  ;;  %445 = vmatprep.mubr.msk.bf16.mxu1 %vm557_vm0, %v556_v0  ;;  %v465_v6 = vld [vmem:[#allocation6 + $0x8] sm:$0xff]   ;;  %v460_v7 = vld [vmem:[#allocation3 + $0x20] sm:$0xff]   ;;  %v466_v8 = vld [vmem:[#allocation6 + $0x10] sm:$0xff]  }
  0x29   :  { %410 = vmatpush3.bf16.msra.mxu0 %v456_v1  ;;  %430 = vmatpush3.bf16.msra.mxu1 %v464_v4  ;;  %v461_v9 = vld [vmem:[#allocation3 + $0x28] sm:$0xff]   ;;  %v467_v10 = vld [vmem:[#allocation6 + $0x18] sm:$0xff]   ;;  %v462_v11 = vld [vmem:[#allocation3 + $0x30] sm:$0xff]  }
  0x2a   :  { %411 = vmatprep.subr.bf16.mxu0 %v556_v0  ;;  %431 = vmatprep.subr.bf16.mxu1 %v556_v0  ;;  %v468_v12 = vld [vmem:[#allocation6 + $0x20] sm:$0xff]   ;;  %v463_v13 = vld [vmem:[#allocation3 + $0x38] sm:$0xff]   ;;  %v58_v15 = vld [vmem:[%s653_s0 + $0x8] sm:$0xff] }
  0x2b   :  { %v57_v14 = vld [vmem:[%s653_s0] sm:$0xff]  ;;  %v469_v16 = vld [vmem:[#allocation6 + $0x28] sm:$0xff]   ;;  %v470_v18 = vld [vmem:[#allocation6 + $0x30] sm:$0xff]  }
  0x2c   :  { %v59_v17 = vpack.c.bf16 %v58_v15, %v57_v14  ;;  %v471_v19 = vld [vmem:[#allocation6 + $0x38] sm:$0xff]   ;;  %v372_v20 = vld [vmem:[%s655_s2] ss:$0 sm:$0xff] }
  0x2d   :  { %412 = vmatpush3.bf16.msra.mxu0 %v457_v2  ;;  %432 = vmatpush3.bf16.msra.mxu1 %v465_v6  ;;  %v381_v30 = vld [vmem:[%s657_s4] ss:$0 sm:$0xff]  ;;  %s558_s4 = smov [#allocation8]  }
  0x2e   :  { %413 = vmatprep.subr.bf16.mxu0 %v556_v0  ;;  %433 = vmatprep.subr.bf16.mxu1 %v556_v0  ;;  %v390_v35 = vld [vmem:[%s658_s5] ss:$0 sm:$0xff]  ;;  %s362_s5 = sshll.u32 %s558_s4, 4  ;;  %s363_s5 = int_to_ptr.vmem [resolvable:$true] %s362_s5 }
  0x2f   :  { %s524_s6 = scalar_lea.vmem %s363_s5, 16  ;;  %s528_s12 = scalar_lea.vmem %s363_s5, 32 }
  0x30   :  { %p525_p2 = scmp.ne.s32.totalorder %s363_s5, %s524_s6  ;;  %p529_p3 = scmp.lt.s32.totalorder %s363_s5, %s363_s5 }
  0x31   :  { %414 = vmatpush3.bf16.msra.mxu0 %v458_v3  ;;  %434 = vmatpush3.bf16.msra.mxu1 %v466_v8  ;;  %p530_p4 = scmp.lt.s32.totalorder %s528_s12, %s524_s6 }
  0x32   :  { %415 = vmatprep.subr.bf16.mxu0 %v556_v0  ;;  %435 = vmatprep.subr.bf16.mxu1 %v556_v0 }
  0x33   :  { %p531_p5 = por %p530_p4, %p529_p3 }
  0x35   :  { %416 = vmatpush3.bf16.msra.mxu0 %v459_v5  ;;  %436 = vmatpush3.bf16.msra.mxu1 %v467_v10  ;;  %p532_p6 = pnand %p531_p5, %p525_p2 }
  0x36   :  { %417 = vmatprep.subr.bf16.mxu0 %v556_v0  ;;  %437 = vmatprep.subr.bf16.mxu1 %v556_v0 }
  0x39   :  { %418 = vmatpush3.bf16.msra.mxu0 %v460_v7  ;;  %438 = vmatpush3.bf16.msra.mxu1 %v468_v12 }
  0x3a   :  { %419 = vmatprep.subr.bf16.mxu0 %v556_v0  ;;  %439 = vmatprep.subr.bf16.mxu1 %v556_v0 }
  0x3d   :  { %420 = vmatpush3.bf16.msra.mxu0 %v461_v9  ;;  %440 = vmatpush3.bf16.msra.mxu1 %v469_v16 }
  0x3e   :  { %421 = vmatprep.subr.bf16.mxu0 %v556_v0  ;;  %441 = vmatprep.subr.bf16.mxu1 %v556_v0 }
  0x41   :  { %422 = vmatpush3.bf16.msra.mxu0 %v462_v11  ;;  %442 = vmatpush3.bf16.msra.mxu1 %v470_v18 }
  0x42   :  { %423 = vmatprep.subr.bf16.mxu0 %v556_v0  ;;  %443 = vmatprep.subr.bf16.mxu1 %v556_v0 }
  0x45   :  { %424 = vmatpush3.bf16.msra.mxu0 %v463_v13  ;;  %444 = vmatpush3.bf16.msra.mxu1 %v471_v19 }
  0x48   :  { %426 = vmatmul.mubr.bf16.vlgmr.msra.gmra.mrb[0].mxu0 %v59_v17 }
 0x11b   :  { %v165_v21 = vpop.f32.mrb[0].mxu0 }
 0x11c   :  { %v166_v22 = vadd.f32 %v372_v20, %v165_v21  ;;  %v427_v23 = vpop.f32.mrb[1].mxu0 }
 0x11d   :  { %v168_v24 = vpop.f32.mrb[2].mxu0 }
 0x11e   :  { %v169_v25 = vadd.f32 %v372_v20, %v168_v24  ;;  %v428_v26 = vpop.f32.mrb[3].mxu0  ;;  %v172_v27 = vmax.f32 %v166_v22, 0.0 }
 0x120   :  { %v173_v28 = vmax.f32 %v169_v25, 0.0 }
 0x122   :  { %v174_v29 = vpack.c.bf16 %v173_v28, %v172_v27 }
 0x124   :  { %446 = vmatmul.mubr.bf16.vlgmr.msra.gmra.mrb[0].mxu1 %v174_v29 }
 0x1f7   :  { %v280_v31 = vpop.f32.mrb[0].mxu1 }
 0x1f8   :  { %v281_v32 = vadd.f32 %v381_v30, %v280_v31  ;;  %v447_v33 = vpop.f32.mrb[1].mxu1 }
 0x1f9   :  { %v283_v34 = vpop.f32.mrb[2].mxu1 }
 0x1fa   :  { %v287_v36 = vmax.f32 %v281_v32, 0.0  ;;  %v284_v37 = vadd.f32 %v381_v30, %v283_v34  ;;  %v448_v38 = vpop.f32.mrb[3].mxu1 }
 0x1fc   :  { %v288_v39 = vmax.f32 %v284_v37, 0.0  ;;  %v296_v40 = vmul.f32 %v390_v35, %v287_v36 }
 0x1fe   :  { %298 = vadd.xlane.f32.xlu0 %v296_v40  ;;  %v297_v41 = vmul.f32 %v390_v35, %v288_v39 }
 0x202   :  { %300 = vadd.xlane.f32.xlu0 %v297_v41 }
 0x28b   :  { %v299_v43 = vpop.xlane.xlu0 %298 }
 0x28c   :  { %v304_v44 = vadd.f32 %v303_v42, %v299_v43 }
 0x28e   :  { %v313_v45 = vmul.f32 -1.0, %v304_v44 }
 0x28f   :  { %v301_v46 = vpop.xlane.xlu0 %300 }
 0x290   :  { %v317_v47 = vand.u32 2147483647, %v313_v45  ;;  %v305_v48 = vadd.f32 %v303_v42, %v301_v46  ;;  %v315_v4 = vmax.f32 %v313_v45, 0.0 }
 0x292   :  { %v319_v49 = vsub.f32 0.0, %v317_v47  ;;  %v318_v50 = vand.u32 2147483647, %v305_v48  ;;  %v316_v9 = vmax.f32 %v305_v48, 0.0 }
 0x294   :  { %v321_v51 = vmul.f32 1.442695, %v319_v49  ;;  %v320_v52 = vsub.f32 0.0, %v318_v50 }
 0x296   :  { %472 = vpow2.f32 %v321_v51  ;;  %v323_v53 = vmul.f32 1.442695, %v320_v52 }
 0x298   :  { %474 = vpow2.f32 %v323_v53 }
 0x2a0   :  { %v473_v54 = vpop.eup %472 }
 0x2a1   :  { %v325_v55 = vadd.f32 1.0, %v473_v54  ;;  %v328_v58 = vmul.f32 -0.5, %v473_v54  ;;  %v331_v61 = vand.u32 2147483647, %v473_v54 }
 0x2a2   :  { %v475_v56 = vpop.eup %474 }
 0x2a3   :  { %476 = vlog2.f32 %v325_v55  ;;  %v334_v57 = vadd.f32 1.0, %v475_v56  ;;  %v337_v59 = vmul.f32 -0.5, %v475_v56  ;;  %v329_v60 = vadd.f32 1.0, %v328_v58 }
 0x2a4   :  { %v340_v0 = vand.u32 2147483647, %v475_v56  ;;  %vm332_vm1 = vcmp.lt.f32.partialorder %v331_v61, 0.0004427343 }
 0x2a5   :  { %478 = vlog2.f32 %v334_v57  ;;  %v338_v62 = vadd.f32 1.0, %v337_v59  ;;  %v330_v2 = vmul.f32 %v473_v54, %v329_v60 }
 0x2a6   :  { %vm341_vm2 = vcmp.lt.f32.partialorder %v340_v0, 0.0004427343 }
 0x2a7   :  { %v339_v7 = vmul.f32 %v475_v56, %v338_v62 }
 0x2ad   :  { %v477_v63 = vpop.eup %476 }
 0x2ae   :  { %v327_v1 = vmul.f32 0.6931472, %v477_v63 }
 0x2af   :  { %v479_v3 = vpop.eup %478 }
 0x2b0   :  { %v333_v5 = vsel %vm332_vm1, %v330_v2, %v327_v1  ;;  %v336_v6 = vmul.f32 0.6931472, %v479_v3 }
 0x2b1   :  { %v343_v8 = vadd.f32 %v333_v5, %v315_v4 }
 0x2b2   :  { %v342_v10 = vsel %vm341_vm2, %v339_v7, %v336_v6 }
 0x2b3   :  { %v344_v11 = vadd.f32 %v342_v10, %v316_v9  ;;  %v345_v12 = vmul.f32 0.0625, %v343_v8 }
 0x2b5   :  { %v346_v13 = vmul.f32 0.0625, %v344_v11 }
 0x2b7   :  { %v347_v14 = vadd.f32 %v346_v13, %v345_v12 }
 0x2b9   :  { %v348_v15 = vrot.slane %v347_v14, 4 }
 0x2bb   :  { %v349_v16 = vadd.f32 %v348_v15, %v347_v14 }
 0x2bd   :  { %v350_v17 = vrot.slane %v349_v16, 2 }
 0x2bf   :  { %v351_v18 = vadd.f32 %v350_v17, %v349_v16 }
 0x2c1   :  { %v352_v19 = vrot.slane %v351_v18, 1 }
 0x2c3   :  { %v353_v20 = vadd.f32 %v352_v19, %v351_v18 }
 0x2c5   :  { %355 = vst.msk [vmem:[#allocation8] sm:$0x1] %vm354_vm3, %v353_v20 }
 0x2c6   :  { %535 = shalt.err (!%p532_p6)
}
 0x2c7   :  { %s536_s15 = scalar_lea.hbm %s660_s7, 16 }
 0x2c8   :  { %p537_p7 = scmp.ne.s32.totalorder %s660_s7, %s536_s15  ;;  %p540_p8 = scmp.lt.u32.totalorder %s536_s15, %s660_s7 }
 0x2ca   :  { %p542_p9 = pnand %p540_p8, %p537_p7 }
 0x2cc   :  { %545 = shalt.err (!%p542_p9)
}
 0x2cd   :  { %365 = dma.vmem_to_hbm [thread:$0]  %s363_s5, 16, %s660_s7, [#allocation5]  }
 0x2ce   :  { %550 = dma.done.wait [#allocation5], 16  }
 0x2cf   :  { %551 = vsyncadd [#allocation5], 4294967280 }
 0x2d0   :  { %369 = vsyncpa [#allocation4], 1 }
 0x2d1   :  { %370 = vsyncpa [#allocation7], 1 }
 0x2d2   :  { %371 = vsyncpa [#allocation5], 1 }

</bundles_post_ra>
